<compile_context>
chip_gen: v6e
topology: v6e:2x2x1
jax: 0.10.0
libtpu: 0.0.40
codegen_flags: <defaults>
</compile_context>

<pallas_src>
import functools

import jax
import jax.numpy as jnp
from jax.experimental import pallas as pl
from jax.experimental.pallas import tpu as pltpu


# ----------------------------------------------------------------------------
# Kernel: TB images -> 3x3 conv (3 banded matmuls, M = TB*H) -> +bias -> ReLU
#         -> global average pool -> lane-dense (TB, 128) store.
# ----------------------------------------------------------------------------
def conv_pool_kernel(x_ref, w_ref, b_ref, o_ref, *, TB, H, W, C_pack, N2):
    # x_ref: (TB, H+2, K2)  bf16 zero-padded NHWC input, (W,C) flattened
    # w_ref: (3, K2, N2)    bf16 block-banded conv weight (resident)
    # b_ref: (1, N2)        f32 bias per packed output column (resident)
    # o_ref: (TB, 128)      f32 pooled output slab (lane-dense)
    M = TB * H
    K2 = x_ref.shape[-1]

    # 3x3 conv as three row-shifted banded matmuls, batched over TB images.
    # (TB, H, K2) -> (TB*H, K2) is a layout-preserving sublane merge (H % 8 == 0).
    acc = jnp.dot(x_ref[:, 0:H, :].reshape(M, K2), w_ref[0],
                  preferred_element_type=jnp.float32)              # (M, N2) f32
    for di in (1, 2):
        acc = acc + jnp.dot(x_ref[:, di:di + H, :].reshape(M, K2), w_ref[di],
                            preferred_element_type=jnp.float32)

    # f32 epilogue: bias + ReLU (before the pool).
    acc = jnp.maximum(acc + b_ref[...], 0.0)                       # (M, N2)

    # Global average pool, step 1: pairwise tree over the N2/128 lane blocks
    # (each block packs 128/C_pack output spatial columns).
    nblk = N2 // 128
    blocks = [acc[:, j * 128:(j + 1) * 128] for j in range(nblk)]
    while len(blocks) > 1:
        nxt = [blocks[i] + blocks[i + 1] for i in range(0, len(blocks) - 1, 2)]
        if len(blocks) % 2:
            nxt.append(blocks[-1])
        blocks = nxt
    s = blocks[0]                                                  # (M, 128)

    # Step 2: reduce the 128/C_pack packed columns inside the 128-lane block
    # via lane rotations (XLU slot); channel sums end up in lanes [0, C_pack).
    shift = 64
    while shift >= C_pack:
        s = s + pltpu.roll(s, shift=128 - shift, axis=1)
        shift //= 2

    # Step 3: per-image sum over the H rows -> (TB, 128), single unmasked store.
    pooled = jnp.sum(s.reshape(TB, H, 128), axis=1)                # (TB, 128)
    o_ref[...] = pooled * (1.0 / float(H * W))


def hf_model_forward(x_nchw, w_conv, b_conv):
    """Pallas-backed equivalent of HFModel.forward for a conv+GAP backbone.

    x_nchw : (B, C_in, H, W)  float32 (PyTorch NCHW convention)
    w_conv : (C_out, C_in, 3, 3)
    b_conv : (C_out,)
    returns: (B, C_out)  ==  pooler_output.squeeze(-1).squeeze(-1)
    """
    B, C_in, H, W = x_nchw.shape
    C_out, _, kh, kw = w_conv.shape
    assert (kh, kw) == (3, 3)
    assert C_out <= 128, "TODO(synk): tile N over channel blocks for C_out > 128"

    # ---- batch blocking: TB images per step so M = TB*H >= ~128 MXU rows.
    TB = max(1, 128 // H)
    if TB >= B:
        TB = B                      # single step; store block == full batch dim
    elif TB % 8 != 0:
        TB = max(8, (TB // 8) * 8)  # keep the (TB,128) store tile sublane-aligned
    B_pad = -(-B // TB) * TB        # pad batch with zero images (sliced off below)

    # ---- pack G output spatial columns per 128-lane block instead of padding
    #      channels to 128.  C_pack = next power of two >= C_out (divides 128).
    C_pack = 1
    while C_pack < C_out:
        C_pack *= 2
    G = 128 // C_pack
    Wv = -(-W // G) * G             # virtual zero columns so N2 % 128 == 0
    N2 = Wv * C_pack
    K2 = (W + 2) * C_in

    # ---- layout glue (pure JAX; no HBM im2col, input traffic stays O(B*H*W*C_in)).
    x_nhwc = jnp.transpose(x_nchw, (0, 2, 3, 1))                   # NCHW -> NHWC
    xp = jnp.pad(x_nhwc, ((0, B_pad - B), (1, 1), (1, 1), (0, 0)))  # conv pad=1
    xp2 = xp.reshape(B_pad, H + 2, K2).astype(jnp.bfloat16)        # bf16 MXU operand

    # block-banded weight: w_big[di, (j+dj)*C_in + ci, j*C_pack + co] = w[co,ci,di,dj]
    w4 = jnp.transpose(w_conv, (2, 3, 1, 0)).astype(jnp.float32)   # (3,3,C_in,C_out)
    w4 = jnp.pad(w4, ((0, 0), (0, 0), (0, 0), (0, C_pack - C_out)))
    wblk = w4.reshape(3, 3 * C_in, C_pack)
    w_big = jnp.zeros((3, K2, N2), jnp.float32)
    for j in range(W):                                             # virtual cols stay 0
        w_big = w_big.at[:, j * C_in:j * C_in + 3 * C_in,
                         j * C_pack:(j + 1) * C_pack].set(wblk)
    w_big = w_big.astype(jnp.bfloat16)

    # bias tiled over the real columns only; padded channels / virtual columns
    # must be exactly zero so ReLU keeps them at 0 and the pooled mean is clean.
    b_pad = jnp.pad(b_conv.astype(jnp.float32), (0, C_pack - C_out))
    b_big = jnp.pad(jnp.tile(b_pad, W), (0, (Wv - W) * C_pack)).reshape(1, N2)

    kernel = functools.partial(conv_pool_kernel, TB=TB, H=H, W=W,
                               C_pack=C_pack, N2=N2)

    out = pl.pallas_call(
        kernel,
        out_shape=jax.ShapeDtypeStruct((B_pad, 128), jnp.float32),
        grid=(B_pad // TB,),
        in_specs=[
            pl.BlockSpec((TB, H + 2, K2), lambda i: (i, 0, 0)),    # per-step batch tile
            pl.BlockSpec((3, K2, N2), lambda i: (0, 0, 0)),        # resident bf16 weight
            pl.BlockSpec((1, N2), lambda i: (0, 0)),               # resident bias
        ],
        out_specs=pl.BlockSpec((TB, 128), lambda i: (i, 0)),       # lane-dense slab store
        compiler_params=pltpu.CompilerParams(
            dimension_semantics=("parallel",),   # megacore / v7x 2-TC batch split
            vmem_limit_bytes=32 * 1024 * 1024,   # safe on v5e/v6e/v7x
        ),
    )(xp2, w_big, b_big)

    return out[:B, :C_out]                       # drop batch / channel padding


if __name__ == "__main__":
    # Small, deterministic shapes consistent with an image backbone input.
    B, C_in, H, W = 2, 4, 16, 16
    C_out = 32

    key = jax.random.PRNGKey(0)
    kx, kw, kb = jax.random.split(key, 3)
    x = jax.random.normal(kx, (B, C_in, H, W), dtype=jnp.float32)
    w_conv = 0.1 * jax.random.normal(kw, (C_out, C_in, 3, 3), dtype=jnp.float32)
    b_conv = 0.01 * jax.random.normal(kb, (C_out,), dtype=jnp.float32)

    out = hf_model_forward(x, w_conv, b_conv)
    out = jax.block_until_ready(out)
    assert out.shape == (B, C_out), out.shape

    # Reference: f32 conv + ReLU + global average pool (loose tol: MXU runs bf16).
    ref_conv = jax.lax.conv_general_dilated(
        x, w_conv, window_strides=(1, 1), padding="SAME",
        dimension_numbers=("NCHW", "OIHW", "NCHW"))
    ref = jnp.maximum(ref_conv + b_conv[None, :, None, None], 0.0).mean(axis=(2, 3))
    err = float(jnp.max(jnp.abs(out - ref)))
    assert err < 3e-2, f"max abs err {err}"

    print("KERNEL_OK")
</pallas_src>

<mosaic_0001>
module attributes {stable_mosaic.version = 11 : i64} {
  func.func @conv_pool_kernel(%arg0: i32, %arg1: memref<2x18x72xbf16, #tpu.memory_space<vmem>>, %arg2: memref<3x72x512xbf16, #tpu.memory_space<vmem>>, %arg3: memref<1x512xf32, #tpu.memory_space<vmem>>, %arg4: memref<2x128xf32, #tpu.memory_space<vmem>>) attributes {dimension_semantics = [#tpu.dimension_semantics<parallel>], iteration_bounds = array<i64: 1>, scalar_prefetch = 0 : i64, scratch_operands = 0 : i64, tpu.core_type = #tpu.core_type<tc>, window_params = [{transform_indices = @transform_0, window_bounds = array<i64: 2, 18, 72>}, {pipeline_mode = #tpu.pipeline_mode<synchronous>, transform_indices = @transform_1, window_bounds = array<i64: 3, 72, 512>}, {pipeline_mode = #tpu.pipeline_mode<synchronous>, transform_indices = @transform_2, window_bounds = array<i64: 1, 512>}, {transform_indices = @transform_3, window_bounds = array<i64: 2, 128>}]} {
    %c0 = arith.constant 0 : index
    %c0_0 = arith.constant 0 : index
    %c0_1 = arith.constant 0 : index
    %0 = vector.load %arg1[%c0, %c0_0, %c0_1] : memref<2x18x72xbf16, #tpu.memory_space<vmem>>, vector<2x16x72xbf16>
    %1 = vector.shape_cast %0 : vector<2x16x72xbf16> to vector<32x72xbf16>
    %c0_2 = arith.constant 0 : index
    %c0_3 = arith.constant 0 : index
    %c0_4 = arith.constant 0 : index
    %2 = vector.load %arg2[%c0_2, %c0_3, %c0_4] : memref<3x72x512xbf16, #tpu.memory_space<vmem>>, vector<1x72x512xbf16>
    %3 = vector.shape_cast %2 : vector<1x72x512xbf16> to vector<72x512xbf16>
    %cst = arith.constant dense<0.000000e+00> : vector<32x512xf32>
    %4 = tpu.matmul %1, %3, %cst {dimension_numbers = #tpu.dot_dimension_numbers<[1], [0], [0], [1], [0, 0, 1, 1], [], []>} : vector<32x72xbf16>, vector<72x512xbf16>, vector<32x512xf32> -> vector<32x512xf32>
    %c0_5 = arith.constant 0 : index
    %c1 = arith.constant 1 : index
    %c0_6 = arith.constant 0 : index
    %5 = vector.load %arg1[%c0_5, %c1, %c0_6] : memref<2x18x72xbf16, #tpu.memory_space<vmem>>, vector<2x16x72xbf16>
    %6 = vector.shape_cast %5 : vector<2x16x72xbf16> to vector<32x72xbf16>
    %c1_7 = arith.constant 1 : index
    %c0_8 = arith.constant 0 : index
    %c0_9 = arith.constant 0 : index
    %7 = vector.load %arg2[%c1_7, %c0_8, %c0_9] : memref<3x72x512xbf16, #tpu.memory_space<vmem>>, vector<1x72x512xbf16>
    %8 = vector.shape_cast %7 : vector<1x72x512xbf16> to vector<72x512xbf16>
    %cst_10 = arith.constant dense<0.000000e+00> : vector<32x512xf32>
    %9 = tpu.matmul %6, %8, %cst_10 {dimension_numbers = #tpu.dot_dimension_numbers<[1], [0], [0], [1], [0, 0, 1, 1], [], []>} : vector<32x72xbf16>, vector<72x512xbf16>, vector<32x512xf32> -> vector<32x512xf32>
    %10 = arith.addf %4, %9 : vector<32x512xf32>
    %c0_11 = arith.constant 0 : index
    %c2 = arith.constant 2 : index
    %c0_12 = arith.constant 0 : index
    %11 = vector.load %arg1[%c0_11, %c2, %c0_12] : memref<2x18x72xbf16, #tpu.memory_space<vmem>>, vector<2x16x72xbf16>
    %12 = vector.shape_cast %11 : vector<2x16x72xbf16> to vector<32x72xbf16>
    %c2_13 = arith.constant 2 : index
    %c0_14 = arith.constant 0 : index
    %c0_15 = arith.constant 0 : index
    %13 = vector.load %arg2[%c2_13, %c0_14, %c0_15] : memref<3x72x512xbf16, #tpu.memory_space<vmem>>, vector<1x72x512xbf16>
    %14 = vector.shape_cast %13 : vector<1x72x512xbf16> to vector<72x512xbf16>
    %cst_16 = arith.constant dense<0.000000e+00> : vector<32x512xf32>
    %15 = tpu.matmul %12, %14, %cst_16 {dimension_numbers = #tpu.dot_dimension_numbers<[1], [0], [0], [1], [0, 0, 1, 1], [], []>} : vector<32x72xbf16>, vector<72x512xbf16>, vector<32x512xf32> -> vector<32x512xf32>
    %16 = arith.addf %10, %15 : vector<32x512xf32>
    %c0_17 = arith.constant 0 : index
    %c0_18 = arith.constant 0 : index
    %17 = vector.load %arg3[%c0_17, %c0_18] : memref<1x512xf32, #tpu.memory_space<vmem>>, vector<1x512xf32>
    %18 = vector.broadcast %17 : vector<1x512xf32> to vector<32x512xf32>
    %19 = arith.addf %16, %18 : vector<32x512xf32>
    %cst_19 = arith.constant 0.000000e+00 : f32
    %20 = vector.broadcast %cst_19 : f32 to vector<32x512xf32>
    %21 = arith.maximumf %19, %20 : vector<32x512xf32>
    %22 = vector.extract_strided_slice %21 {offsets = [0, 0], sizes = [32, 128], strides = [1, 1]} : vector<32x512xf32> to vector<32x128xf32>
    %23 = vector.extract_strided_slice %21 {offsets = [0, 128], sizes = [32, 128], strides = [1, 1]} : vector<32x512xf32> to vector<32x128xf32>
    %24 = vector.extract_strided_slice %21 {offsets = [0, 256], sizes = [32, 128], strides = [1, 1]} : vector<32x512xf32> to vector<32x128xf32>
    %25 = vector.extract_strided_slice %21 {offsets = [0, 384], sizes = [32, 128], strides = [1, 1]} : vector<32x512xf32> to vector<32x128xf32>
    %26 = arith.addf %22, %23 : vector<32x128xf32>
    %27 = arith.addf %24, %25 : vector<32x128xf32>
    %28 = arith.addf %26, %27 : vector<32x128xf32>
    %c64_i32 = arith.constant 64 : i32
    %29 = tpu.dynamic_rotate %28 by %c64_i32 dim 1 : vector<32x128xf32>, i32 -> vector<32x128xf32>
    %30 = arith.addf %28, %29 : vector<32x128xf32>
    %c96_i32 = arith.constant 96 : i32
    %31 = tpu.dynamic_rotate %30 by %c96_i32 dim 1 : vector<32x128xf32>, i32 -> vector<32x128xf32>
    %32 = arith.addf %30, %31 : vector<32x128xf32>
    %33 = vector.shape_cast %32 : vector<32x128xf32> to vector<2x16x128xf32>
    %cst_20 = arith.constant dense<0.000000e+00> : vector<2x128xf32>
    %34 = vector.multi_reduction <add>, %33, %cst_20 [1] : vector<2x16x128xf32> to vector<2x128xf32>
    %cst_21 = arith.constant 3.906250e-03 : f32
    %35 = vector.broadcast %cst_21 : f32 to vector<2x128xf32>
    %36 = arith.mulf %34, %35 : vector<2x128xf32>
    %c0_22 = arith.constant 0 : index
    %c0_23 = arith.constant 0 : index
    %37 = vector.load %arg4[%c0_22, %c0_23] : memref<2x128xf32, #tpu.memory_space<vmem>>, vector<2x128xf32>
    tpu.vector_store %arg4[%c0_22, %c0_23], %36 {strides = array<i32>} : memref<2x128xf32, #tpu.memory_space<vmem>>, vector<2x128xf32>,
    return
  }
  func.func @transform_0(%arg0: i32) -> (i32, i32, i32) {
    %c0_i32 = arith.constant 0 : i32
    %c0_i32_0 = arith.constant 0 : i32
    %c0_i32_1 = arith.constant 0 : i32
    return %arg0, %c0_i32, %c0_i32_0 : i32, i32, i32
  }
  func.func @transform_1(%arg0: i32) -> (i32, i32, i32) {
    %c0_i32 = arith.constant 0 : i32
    %c0_i32_0 = arith.constant 0 : i32
    %c0_i32_1 = arith.constant 0 : i32
    %c0_i32_2 = arith.constant 0 : i32
    return %c0_i32, %c0_i32_0, %c0_i32_1 : i32, i32, i32
  }
  func.func @transform_2(%arg0: i32) -> (i32, i32) {
    %c0_i32 = arith.constant 0 : i32
    %c0_i32_0 = arith.constant 0 : i32
    %c0_i32_1 = arith.constant 0 : i32
    return %c0_i32, %c0_i32_0 : i32, i32
  }
  func.func @transform_3(%arg0: i32) -> (i32, i32) {
    %c0_i32 = arith.constant 0 : i32
    %c0_i32_0 = arith.constant 0 : i32
    return %arg0, %c0_i32 : i32, i32
  }
}

</mosaic_0001>

<bundles_post_ra>
// kernel: tpu_custom_call.1
= control target key start
LH: loop header
LB: loop body
LE: loop exit
PB: predicated region body
PF: predicated region fallthrough
CT: control target
= control target key end

     0   :  { %8 = vsyncpa [#allocation3], 0  ;;  %s1384_s0 = inlined_call_operand.vmem [shape: bf16[2,18,72], index: 0, kind: input, shape index: {}]   ;;  %s1385_s1 = inlined_call_operand.hbm [shape: bf16[3,72,512], index: 1, kind: input, shape index: {}]   ;;  %s1386_s2 = inlined_call_operand.vmem [shape: f32[1,512], index: 2, kind: input, shape index: {}]   ;;  %s1387_s3 = inlined_call_operand.hbm [shape: f32[2,128], index: 3, kind: output, shape index: {}]  }
   0x1   :  { %9 = vsyncpa [#allocation4], 0  ;;  %s1198_s12 = smov [#allocation2]  }
   0x2   :  { %s17_s13 = sshll.u32 %s1198_s12, 4  ;;  %s18_s13 = int_to_ptr.vmem [resolvable:$true] %s17_s13 }
   0x3   :  { %s1162_s14 = scalar_lea.vmem %s18_s13, 6912  ;;  %p1167_p1 = scmp.lt.s32.totalorder %s18_s13, %s18_s13 }
   0x4   :  { %p1163_p0 = scmp.ne.s32.totalorder %s18_s13, %s1162_s14  ;;  %p1168_p2 = scmp.lt.s32.totalorder %s1162_s14, %s1162_s14 }
   0x6   :  { %p1169_p3 = por %p1168_p2, %p1167_p1 }
   0x8   :  { %p1170_p4 = pnand %p1169_p3, %p1163_p0 }
   0xa   :  { %1173 = shalt.err (!%p1170_p4)
}
   0xb   :  { %s1199_s15 = smov 256   ;;  %s1200_s16 = smov 16  }
   0xc   :  { %23 = dma.hbm_to_vmem [thread:$0]  %s1385_s1, 6912, %s18_s13, [#allocation3], %s1199_s15, %s1199_s15, %s1200_s16  }
   0xd   :  { %1194 = dma.done.wait [#allocation3], 6912  }
   0xe   :  { %1195 = vsyncadd [#allocation3], 4294960384  ;;  %v1201_v0 = vmov 0   ;;  %v122_v1 = vld [vmem:[#allocation2 + $0x110] sm:$0xff]  ;;  %vm227_vm0 = vcmask 1043456   ;;  %v123_v2 = vld [vmem:[#allocation2 + $0x118] sm:$0xff] }
   0xf   :  { %272 = vmatprep.mubr.bf16.mxu0 %v1201_v0  ;;  %325 = vmatprep.mubr.bf16.mxu1 %v1201_v0  ;;  %v994_v3 = vcombine.high %v122_v1, %v122_v1  ;;  %v996_v4 = vcombine.high %v123_v2, %v123_v2  ;;  %v993_v5 = vcombine.low %v122_v1, %v122_v1  ;;  %v1072_v7 = vld [vmem:[#allocation2 + $0xf4] ss:$16 sps:$4 sm:$0xff]   ;;  %v1074_v8 = vld [vmem:[#allocation2 + $0xfc] ss:$16 sps:$4 sm:$0xff]   ;;  %v1076_v11 = vld [vmem:[#allocation2 + $0xf0] ss:$16 sps:$4 sm:$0xff]  }
  0x10   :  { %v995_v6 = vcombine.low %v123_v2, %v123_v2  ;;  %v1077_v12 = vld [vmem:[#allocation2 + $0xf8] ss:$16 sps:$4 sm:$0xff]   ;;  %v1078_v13 = vld [vmem:[#allocation2 + $0xd4] ss:$16 sps:$4 sm:$0xff]   ;;  %v1080_v14 = vld [vmem:[#allocation2 + $0xdc] ss:$16 sps:$4 sm:$0xff]  }
  0x11   :  { %997 = vmatprep.subr.msk.bf16.mxu0 %vm227_vm0, %v994_v3  ;;  %1000 = vmatprep.subr.msk.bf16.mxu1 %vm227_vm0, %v996_v4  ;;  %v229_v9 = vsel %vm227_vm0, %v993_v5, 0  ;;  %v1082_v15 = vld [vmem:[#allocation2 + $0xd0] ss:$16 sps:$4 sm:$0xff]   ;;  %v1083_v16 = vld [vmem:[#allocation2 + $0xd8] ss:$16 sps:$4 sm:$0xff]   ;;  %vm220_vm4 = vcmask 588800  }
  0x12   :  { %v235_v10 = vsel %vm227_vm0, %v995_v6, 0  ;;  %247 = vmatpush1.bf16.msra.mxu0 %v229_v9  ;;  %v1084_v17 = vld [vmem:[#allocation2 + $0xb4] ss:$16 sps:$4 sm:$0xff]   ;;  %v1086_v18 = vld [vmem:[#allocation2 + $0xbc] ss:$16 sps:$4 sm:$0xff]   ;;  %vm576_vm5 = vcmask 1042432  }
  0x13   :  { %300 = vmatpush1.bf16.msra.mxu1 %v235_v10  ;;  %248 = vmatprep.subr.bf16.mxu0 %v1072_v7  ;;  %vm54_vm1 = vsmask.f32 3328  ;;  %v1088_v19 = vld [vmem:[#allocation2 + $0xb0] ss:$16 sps:$4 sm:$0xff]   ;;  %v1089_v20 = vld [vmem:[#allocation2 + $0xb8] ss:$16 sps:$4 sm:$0xff]  }
  0x14   :  { %301 = vmatprep.subr.bf16.mxu1 %v1074_v8  ;;  %v1090_v21 = vld [vmem:[#allocation2 + $0x94] ss:$16 sps:$4 sm:$0xff]   ;;  %v1092_v22 = vld [vmem:[#allocation2 + $0x9c] ss:$16 sps:$4 sm:$0xff]   ;;  %v1237_v23 = vld [vmem:[%s1384_s0] sm:$0xf] }
  0x15   :  { %v1242_v24 = vld [vmem:[%s1384_s0 + $0x4] sm:$0xf]  ;;  %v1247_v25 = vld [vmem:[%s1384_s0 + $0x8] sm:$0x1]  ;;  %v58_v26 = vshrl.u32 %v1237_v23, 16  ;;  %v61_v27 = vshll.u32 %v1237_v23, 16 }
  0x16   :  { %249 = vmatpush1.bf16.msra.mxu0 %v1076_v11  ;;  %v67_v28 = vshll.u32 %v1242_v24, 16  ;;  %v71_v29 = vshrl.u32 %v1242_v24, 16  ;;  %vm55_vm2 = vsmask.f32 7440  ;;  %v77_v30 = vshll.u32 %v1247_v25, 16  ;;  %v50_v31 = vld [vmem:[#allocation2 + $0x80] sm:$0xff] }
  0x17   :  { %302 = vmatpush1.bf16.msra.mxu1 %v1077_v12  ;;  %250 = vmatprep.subr.bf16.mxu0 %v1078_v13  ;;  %v51_v32 = vld [vmem:[#allocation2 + $0x88] sm:$0xff]  ;;  %v60_v33 = vrot.slane %v58_v26, 4  ;;  %v63_v34 = vrot.slane %v61_v27, 5  ;;  %v1094_v37 = vld [vmem:[#allocation2 + $0x90] ss:$16 sps:$4 sm:$0xff]   ;;  %v1021_v42 = vcombine.low %v50_v31, %v50_v31  ;;  %vm1261_vm3 = vmor %vm54_vm1, %vm55_vm2  ;;  %v1022_v45 = vcombine.high %v50_v31, %v50_v31  ;;  %s1203_s8 = smov 96  }
  0x18   :  { %303 = vmatprep.subr.bf16.mxu1 %v1080_v14  ;;  %v69_v35 = vrot.slane %v67_v28, 5  ;;  %v73_v36 = vrot.slane %v71_v29, 4  ;;  %v1095_v38 = vld [vmem:[#allocation2 + $0x98] ss:$16 sps:$4 sm:$0xff]   ;;  %v79_v41 = vrot.slane %v77_v30, 5  ;;  %v1024_v46 = vcombine.high %v51_v32, %v51_v32  ;;  %v610_v28 = vld [vmem:[#allocation2 + $0x1a0] sm:$0xff] }
  0x19   :  { %v64_v39 = vor.u32 %v63_v34, %v60_v33  ;;  %v1257_v43 = vld [vmem:[%s1384_s0 + $0xc] sm:$0xf]  ;;  %v1023_v47 = vcombine.low %v51_v32, %v51_v32  ;;  %v1268_v48 = vld [vmem:[%s1384_s0 + $0x10] sm:$0xf]  ;;  %v1273_v49 = vld [vmem:[%s1384_s0 + $0x14] sm:$0x1]  ;;  %v1052_v32 = vcombine.high %v610_v28, %v610_v28  ;;  %v1051_v34 = vcombine.low %v610_v28, %v610_v28 }
  0x1a   :  { %251 = vmatpush1.bf16.msra.mxu0 %v1082_v15  ;;  %v74_v40 = vor.u32 %v73_v36, %v69_v35  ;;  %v82_v50 = vshrl.u32 %v1257_v43, 16  ;;  %v85_v53 = vshll.u32 %v1257_v43, 16  ;;  %v91_v55 = vshll.u32 %v1268_v48, 16  ;;  %v1102_v61 = vld [vmem:[#allocation2 + $0x64] ss:$16 sps:$4 sm:$0xff]   ;;  %v611_v29 = vld [vmem:[#allocation2 + $0x1a8] sm:$0xff] }
  0x1b   :  { %304 = vmatpush1.bf16.msra.mxu1 %v1083_v16  ;;  %252 = vmatprep.subr.bf16.mxu0 %v1084_v17  ;;  %v65_v51 = vrot.slane %v64_v39, 4  ;;  %v95_v56 = vshrl.u32 %v1268_v48, 16  ;;  %v101_v57 = vshll.u32 %v1273_v49, 16  ;;  %v453_v60 = vsel %vm227_vm0, %v1021_v42, 0  ;;  %v1105_v2 = vld [vmem:[#allocation2 + $0x6c] ss:$16 sps:$4 sm:$0xff]  }
  0x1c   :  { %305 = vmatprep.subr.bf16.mxu1 %v1086_v18  ;;  %v75_v52 = vrot.slane %v74_v40, 4  ;;  %v84_v54 = vrot.slane %v82_v50, 4  ;;  %v87_v62 = vrot.slane %v85_v53, 5  ;;  %v459_v1 = vsel %vm227_vm0, %v1023_v47, 0  ;;  %v1100_v8 = vld [vmem:[#allocation2 + $0x60] ss:$16 sps:$4 sm:$0xff]  }
  0x1d   :  { %v70_v58 = vsel %vm1261_vm3, %v65_v51, %v69_v35  ;;  %v93_v3 = vrot.slane %v91_v55, 5  ;;  %v97_v4 = vrot.slane %v95_v56, 4  ;;  %v103_v7 = vrot.slane %v101_v57, 5  ;;  %v1103_v9 = vld [vmem:[#allocation2 + $0x68] ss:$16 sps:$4 sm:$0xff]   ;;  %s1204_s9 = smov [#allocation5]  }
  0x1e   :  { %253 = vmatpush1.bf16.msra.mxu0 %v1088_v19  ;;  %v80_v59 = vsel %vm1261_vm3, %v75_v52, %v79_v41  ;;  %v88_v5 = vor.u32 %v87_v62, %v84_v54  ;;  %v1108_v12 = vld [vmem:[#allocation2 + $0x44] ss:$16 sps:$4 sm:$0xff]   ;;  %v1111_v13 = vld [vmem:[#allocation2 + $0x4c] ss:$16 sps:$4 sm:$0xff]   ;;  %v1106_v16 = vld [vmem:[#allocation2 + $0x40] ss:$16 sps:$4 sm:$0xff]   ;;  %v1054_v33 = vcombine.high %v611_v29, %v611_v29  ;;  %v1053_v35 = vcombine.low %v611_v29, %v611_v29 }
  0x1f   :  { %306 = vmatpush1.bf16.msra.mxu1 %v1089_v20  ;;  %254 = vmatprep.subr.bf16.mxu0 %v1090_v21  ;;  %v975_v63 = vcombine.low %v70_v58, %v80_v59  ;;  %v98_v6 = vor.u32 %v97_v4, %v93_v3  ;;  %v1109_v17 = vld [vmem:[#allocation2 + $0x48] ss:$16 sps:$4 sm:$0xff]   ;;  %v1114_v19 = vld [vmem:[#allocation2 + $0x24] ss:$16 sps:$4 sm:$0xff]   ;;  %v1117_v20 = vld [vmem:[#allocation2 + $0x2c] ss:$16 sps:$4 sm:$0xff]   ;;  %v1003_v36 = vcombine.low %v1237_v23, %v1242_v24 }
  0x20   :  { %307 = vmatprep.subr.bf16.mxu1 %v1092_v22  ;;  %v89_v10 = vrot.slane %v88_v5, 4  ;;  %v1112_v21 = vld [vmem:[#allocation2 + $0x20] ss:$16 sps:$4 sm:$0xff]   ;;  %v1115_v22 = vld [vmem:[#allocation2 + $0x28] ss:$16 sps:$4 sm:$0xff]   ;;  %vm577_vm6 = vcmask 1046532  }
  0x21   :  { %v99_v11 = vrot.slane %v98_v6, 4  ;;  %v1120_v26 = vld [vmem:[#allocation2 + $0x4] ss:$16 sps:$4 sm:$0xff]   ;;  %v1123_v27 = vld [vmem:[#allocation2 + $0xc] ss:$16 sps:$4 sm:$0xff]   ;;  %v584_v54 = vrot.slane %v1247_v25, 5  ;;  %vm1320_vm7 = vmor %vm576_vm5, %vm577_vm6 }
  0x22   :  { %255 = vmatpush1.bf16.msra.mxu0 %v1094_v37  ;;  %v94_v14 = vsel %vm1261_vm3, %v89_v10, %v93_v3  ;;  %v1118_v30 = vld [vmem:[#allocation2] ss:$16 sps:$4 sm:$0xff]   ;;  %v1121_v31 = vld [vmem:[#allocation2 + $0x8] ss:$16 sps:$4 sm:$0xff]   ;;  %v715_v37 = vsel %vm227_vm0, %v1051_v34, 0  ;;  %v591_v5 = vrot.slane %v1273_v49, 5 }
  0x23   :  { %308 = vmatpush1.bf16.msra.mxu1 %v1095_v38  ;;  %1025 = vmatprep.subr.msk.bf16.mxu0 %vm227_vm0, %v1022_v45  ;;  %v104_v15 = vsel %vm1261_vm3, %v99_v11, %v103_v7  ;;  %v721_v38 = vsel %vm227_vm0, %v1053_v35, 0  ;;  %v1131_v39 = vld [vmem:[#allocation2 + $0x184] ss:$16 sps:$4 sm:$0xff]   ;;  %v1134_v40 = vld [vmem:[#allocation2 + $0x18c] ss:$16 sps:$4 sm:$0xff]   ;;  %v1004_v45 = vcombine.low %v1257_v43, %v1268_v48  ;;  %v850_v35 = vlaneseq  ;;  %s966_s10 = sshll.u32 %s1204_s9, 4  ;;  %s967_s10 = int_to_ptr.vmem [resolvable:$true] %s966_s10 }
  0x24   :  { %1028 = vmatprep.subr.msk.bf16.mxu1 %vm227_vm0, %v1024_v46  ;;  %v976_v18 = vcombine.low %v94_v14, %v104_v15  ;;  %v1129_v41 = vld [vmem:[#allocation2 + $0x180] ss:$16 sps:$4 sm:$0xff]   ;;  %v1132_v23 = vld [vmem:[#allocation2 + $0x188] ss:$16 sps:$4 sm:$0xff]   ;;  %v1138_v42 = vld [vmem:[#allocation2 + $0x164] ss:$16 sps:$4 sm:$0xff]   ;;  %p1179_p6 = scmp.lt.s32.totalorder %s967_s10, %s967_s10 }
  0x25   :  { %998 = vmatmul.mubr.msk.bf16.vlgmr.msra.gmra.mxu0 %vm220_vm4, %v975_v63  ;;  %v1141_v44 = vld [vmem:[#allocation2 + $0x16c] ss:$16 sps:$4 sm:$0xff]   ;;  %v581_v46 = vrot.slane %v1242_v24, 5  ;;  %v1136_v47 = vld [vmem:[#allocation2 + $0x160] ss:$16 sps:$4 sm:$0xff]   ;;  %vm956_vm8 = vcmask 1041409  }
  0x26   :  { %1001 = vmatmul.mubr.msk.bf16.vlgmr.msra.gmra.mxu1 %vm220_vm4, %v975_v63  ;;  %471 = vmatpush1.bf16.msra.mxu0 %v453_v60  ;;  %v1139_v50 = vld [vmem:[#allocation2 + $0x168] ss:$16 sps:$4 sm:$0xff]   ;;  %v1144_v51 = vld [vmem:[#allocation2 + $0x144] ss:$16 sps:$4 sm:$0xff]   ;;  %v1147_v52 = vld [vmem:[#allocation2 + $0x14c] ss:$16 sps:$4 sm:$0xff]  }
  0x27   :  { %524 = vmatpush1.bf16.msra.mxu1 %v459_v1  ;;  %472 = vmatprep.subr.bf16.mxu0 %v1102_v61  ;;  %v570_v53 = vld [vmem:[%s1384_s0] sm:$0xe]  ;;  %v1145_v43 = vld [vmem:[#allocation2 + $0x148] ss:$16 sps:$4 sm:$0xff]   ;;  %v583_v56 = vrot.slane %v581_v46, 4  ;;  %v588_v63 = vrot.slane %v1268_v48, 5 }
  0x28   :  { %525 = vmatprep.subr.bf16.mxu1 %v1105_v2  ;;  %282 = vmatprep.mubr.bf16.mxu0 %v1201_v0  ;;  %v1142_v24 = vld [vmem:[#allocation2 + $0x140] ss:$16 sps:$4 sm:$0xff]   ;;  %v1031_v55 = vrot.slane %v570_v53, 9  ;;  %v1150_v57 = vld [vmem:[#allocation2 + $0x124] ss:$16 sps:$4 sm:$0xff]   ;;  %s1174_s11 = scalar_lea.vmem %s967_s10, 32 }
  0x29   :  { %335 = vmatprep.mubr.bf16.mxu1 %v1201_v0  ;;  %v1153_v58 = vld [vmem:[#allocation2 + $0x12c] ss:$16 sps:$4 sm:$0xff]   ;;  %v1148_v25 = vld [vmem:[#allocation2 + $0x120] ss:$16 sps:$4 sm:$0xff]   ;;  %v1151_v60 = vld [vmem:[#allocation2 + $0x128] ss:$16 sps:$4 sm:$0xff]   ;;  %v585_v62 = vsel %vm1320_vm7, %v583_v56, %v584_v54  ;;  %p1175_p5 = scmp.ne.s32.totalorder %s967_s10, %s1174_s11  ;;  %p1180_p7 = scmp.lt.s32.totalorder %s1174_s11, %s1174_s11 }
  0x2a   :  { %473 = vmatpush1.bf16.msra.mxu0 %v1100_v8  ;;  %v582_v61 = vsel %vm1320_vm7, %v1031_v55, %v581_v46  ;;  %v571_v1 = vld [vmem:[%s1384_s0 + $0xc] sm:$0xe]  ;;  %v590_v4 = vrot.slane %v588_v63, 4 }
  0x2b   :  { %526 = vmatpush1.bf16.msra.mxu1 %v1103_v9  ;;  %474 = vmatprep.subr.bf16.mxu0 %v1108_v12  ;;  %v1033_v2 = vcombine.low %v582_v61, %v585_v62  ;;  %v1032_v3 = vrot.slane %v571_v1, 9  ;;  %p1181_p8 = por %p1180_p7, %p1179_p6 }
  0x2c   :  { %527 = vmatprep.subr.bf16.mxu1 %v1111_v13  ;;  %v592_v6 = vsel %vm1320_vm7, %v590_v4, %v591_v5 }
  0x2d   :  { %999 = vmatmul.mubr.msk.bf16.gmra.mxu0 %vm220_vm4, %v976_v18  ;;  %v589_v48 = vsel %vm1320_vm7, %v1032_v3, %v588_v63  ;;  %p1182_p9 = pnand %p1181_p8, %p1175_p5 }
  0x2e   :  { %1002 = vmatmul.mubr.msk.bf16.gmra.mxu1 %vm220_vm4, %v976_v18  ;;  %475 = vmatpush1.bf16.msra.mxu0 %v1106_v16  ;;  %v1034_v7 = vcombine.low %v589_v48, %v592_v6 }
  0x2f   :  { %528 = vmatpush1.bf16.msra.mxu1 %v1109_v17  ;;  %476 = vmatprep.subr.bf16.mxu0 %v1114_v19 }
  0x30   :  { %529 = vmatprep.subr.bf16.mxu1 %v1117_v20  ;;  %496 = vmatprep.mubr.bf16.mxu0 %v1201_v0 }
  0x31   :  { %549 = vmatprep.mubr.bf16.mxu1 %v1201_v0 }
  0x32   :  { %477 = vmatpush1.bf16.msra.mxu0 %v1112_v21 }
  0x33   :  { %530 = vmatpush1.bf16.msra.mxu1 %v1115_v22  ;;  %478 = vmatprep.subr.bf16.mxu0 %v1120_v26 }
  0x34   :  { %531 = vmatprep.subr.bf16.mxu1 %v1123_v27 }
  0x36   :  { %479 = vmatpush1.bf16.msra.mxu0 %v1118_v30 }
  0x37   :  { %532 = vmatpush1.bf16.msra.mxu1 %v1121_v31  ;;  %1055 = vmatprep.subr.msk.bf16.mxu0 %vm227_vm0, %v1052_v32 }
  0x38   :  { %1058 = vmatprep.subr.msk.bf16.mxu1 %vm227_vm0, %v1054_v33 }
  0x39   :  { %1026 = vmatmul.mubr.msk.bf16.vlgmr.msra.gmra.mxu0 %vm220_vm4, %v1003_v36 }
  0x3a   :  { %1029 = vmatmul.mubr.msk.bf16.vlgmr.msra.gmra.mxu1 %vm220_vm4, %v1003_v36  ;;  %733 = vmatpush1.bf16.msra.mxu0 %v715_v37 }
  0x3b   :  { %786 = vmatpush1.bf16.msra.mxu1 %v721_v38  ;;  %734 = vmatprep.subr.bf16.mxu0 %v1131_v39  ;;  %v851_v38 = vshrl.u32 %v850_v35, 7 }
  0x3c   :  { %787 = vmatprep.subr.bf16.mxu1 %v1134_v40  ;;  %506 = vmatprep.mubr.bf16.mxu0 %v1201_v0 }
  0x3d   :  { %559 = vmatprep.mubr.bf16.mxu1 %v1201_v0 }
  0x3e   :  { %735 = vmatpush1.bf16.msra.mxu0 %v1129_v41  ;;  %v852_v41 = vsub.s32 0, %v851_v38 }
  0x3f   :  { %788 = vmatpush1.bf16.msra.mxu1 %v1132_v23  ;;  %736 = vmatprep.subr.bf16.mxu0 %v1138_v42  ;;  %v860_v23 = vsub.s32 2, %v851_v38  ;;  %v856_v42 = vsub.s32 1, %v851_v38 }
  0x40   :  { %789 = vmatprep.subr.bf16.mxu1 %v1141_v44  ;;  %v864_v44 = vsub.s32 3, %v851_v38 }
  0x41   :  { %1027 = vmatmul.mubr.msk.bf16.gmra.mxu0 %vm220_vm4, %v1004_v45 }
  0x42   :  { %1030 = vmatmul.mubr.msk.bf16.gmra.mxu1 %vm220_vm4, %v1004_v45  ;;  %737 = vmatpush1.bf16.msra.mxu0 %v1136_v47  ;;  %v848_v45 = vld [vmem:[%s1386_s2] sm:$0xf]  ;;  %s1202_s2 = smov 64  }
  0x43   :  { %790 = vmatpush1.bf16.msra.mxu1 %v1139_v50  ;;  %738 = vmatprep.subr.bf16.mxu0 %v1144_v51  ;;  %v1354_v53 = vrot.slane %v848_v45, %v852_v41  ;;  %v1360_v55 = vrot.slane %v848_v45, %v864_v44 }
  0x44   :  { %791 = vmatprep.subr.bf16.mxu1 %v1147_v52  ;;  %758 = vmatprep.mubr.bf16.mxu0 %v1201_v0 }
  0x45   :  { %811 = vmatprep.mubr.bf16.mxu1 %v1201_v0 }
  0x46   :  { %739 = vmatpush1.bf16.msra.mxu0 %v1142_v24  ;;  %v1356_v24 = vrot.slane %v848_v45, %v860_v23 }
  0x47   :  { %792 = vmatpush1.bf16.msra.mxu1 %v1145_v43  ;;  %740 = vmatprep.subr.bf16.mxu0 %v1150_v57  ;;  %v1358_v43 = vrot.slane %v848_v45, %v856_v42 }
  0x48   :  { %793 = vmatprep.subr.bf16.mxu1 %v1153_v58 }
  0x4a   :  { %741 = vmatpush1.bf16.msra.mxu0 %v1148_v25 }
  0x4b   :  { %794 = vmatpush1.bf16.msra.mxu1 %v1151_v60 }
  0x4d   :  { %1056 = vmatmul.mubr.msk.bf16.vlgmr.msra.gmra.mxu0 %vm220_vm4, %v1033_v2 }
  0x4e   :  { %1059 = vmatmul.mubr.msk.bf16.vlgmr.msra.gmra.mxu1 %vm220_vm4, %v1033_v2  ;;  %768 = vmatprep.mubr.bf16.mxu0 %v1201_v0 }
  0x4f   :  { %821 = vmatprep.mubr.bf16.mxu1 %v1201_v0 }
  0x55   :  { %1057 = vmatmul.mubr.msk.bf16.gmra.mxu0 %vm220_vm4, %v1034_v7 }
  0x56   :  { %1060 = vmatmul.mubr.msk.bf16.gmra.mxu1 %vm220_vm4, %v1034_v7 }
  0xe5   :  { %v274_v49 = vpop.f32.mrf.mxu0 }
  0xe6   :  { %v327_v8 = vpop.f32.mrf.mxu1 }
  0xe7   :  { %v276_v9 = vpop.f32.mrf.mxu0 }
  0xe8   :  { %v329_v10 = vpop.f32.mrf.mxu1 }
  0xe9   :  { %v278_v11 = vpop.f32.mrf.mxu0 }
  0xea   :  { %v331_v12 = vpop.f32.mrf.mxu1 }
  0xeb   :  { %v280_v13 = vpop.f32.mrf.mxu0 }
  0xec   :  { %v333_v14 = vpop.f32.mrf.mxu1 }
  0xed   :  { %v284_v0 = vpop.f32.mrf.mxu0 }
  0xee   :  { %v337_v15 = vpop.f32.mrf.mxu1 }
  0xef   :  { %v286_v16 = vpop.f32.mrf.mxu0 }
  0xf0   :  { %v339_v17 = vpop.f32.mrf.mxu1 }
  0xf1   :  { %v288_v18 = vpop.f32.mrf.mxu0 }
  0xf2   :  { %v341_v19 = vpop.f32.mrf.mxu1 }
  0xf3   :  { %v1345_v20 = vpop.f32.mrf.mxu0 }
  0xf4   :  { %v1347_v21 = vpop.f32.mrf.mxu1 }
  0xf9   :  { %v498_v22 = vpop.f32.mrf.mxu0 }
  0xfa   :  { %v551_v26 = vpop.f32.mrf.mxu1  ;;  %v499_v50 = vadd.f32 %v498_v22, %v274_v49 }
  0xfb   :  { %v500_v27 = vpop.f32.mrf.mxu0  ;;  %v552_v51 = vadd.f32 %v551_v26, %v327_v8 }
  0xfc   :  { %v553_v28 = vpop.f32.mrf.mxu1  ;;  %v501_v56 = vadd.f32 %v500_v27, %v276_v9 }
  0xfd   :  { %v502_v29 = vpop.f32.mrf.mxu0  ;;  %v554_v57 = vadd.f32 %v553_v28, %v329_v10 }
  0xfe   :  { %v555_v30 = vpop.f32.mrf.mxu1  ;;  %v503_v25 = vadd.f32 %v502_v29, %v278_v11 }
  0xff   :  { %v504_v31 = vpop.f32.mrf.mxu0  ;;  %v556_v60 = vadd.f32 %v555_v30, %v331_v12 }
 0x100   :  { %v557_v32 = vpop.f32.mrf.mxu1  ;;  %v505_v63 = vadd.f32 %v504_v31, %v280_v13 }
 0x101   :  { %v508_v33 = vpop.f32.mrf.mxu0  ;;  %v558_v1 = vadd.f32 %v557_v32, %v333_v14 }
 0x102   :  { %v561_v34 = vpop.f32.mrf.mxu1  ;;  %v509_v4 = vadd.f32 %v508_v33, %v284_v0 }
 0x103   :  { %v510_v36 = vpop.f32.mrf.mxu0  ;;  %v562_v5 = vadd.f32 %v561_v34, %v337_v15 }
 0x104   :  { %v563_v37 = vpop.f32.mrf.mxu1  ;;  %v511_v8 = vadd.f32 %v510_v36, %v286_v16 }
 0x105   :  { %v512_v39 = vpop.f32.mrf.mxu0  ;;  %v564_v9 = vadd.f32 %v563_v37, %v339_v17 }
 0x106   :  { %v565_v40 = vpop.f32.mrf.mxu1  ;;  %v513_v12 = vadd.f32 %v512_v39, %v288_v18 }
 0x107   :  { %v514_v46 = vpop.f32.mrf.mxu0  ;;  %v566_v22 = vadd.f32 %v565_v40, %v341_v19 }
 0x108   :  { %v1352_v47 = vpop.f32.mrf.mxu1 }
 0x10d   :  { %v760_v52 = vpop.f32.mrf.mxu0 }
 0x10e   :  { %v813_v54 = vpop.f32.mrf.mxu1  ;;  %v832_v58 = vadd.f32 %v760_v52, %v499_v50  ;;  %v515_v50 = vadd.f32 %v514_v46, %v1345_v20 }
 0x10f   :  { %v834_v59 = vadd.f32 %v813_v54, %v552_v51  ;;  %v762_v61 = vpop.f32.mrf.mxu0 }
 0x110   :  { %v815_v62 = vpop.f32.mrf.mxu1  ;;  %v833_v2 = vadd.f32 %v762_v61, %v501_v56  ;;  %v870_v48 = vadd.f32 %v1354_v53, %v832_v58  ;;  %v568_v58 = vadd.f32 %v1352_v47, %v1347_v21 }
 0x111   :  { %v835_v3 = vadd.f32 %v815_v62, %v554_v57  ;;  %v872_v6 = vadd.f32 %v1356_v24, %v834_v59  ;;  %v764_v7 = vpop.f32.mrf.mxu0 }
 0x112   :  { %v817_v49 = vpop.f32.mrf.mxu1  ;;  %v871_v10 = vadd.f32 %v1358_v43, %v833_v2  ;;  %v836_v13 = vadd.f32 %v764_v7, %v503_v25  ;;  %v886_v30 = vmax.f32 %v870_v48, 0.0 }
 0x113   :  { %v873_v11 = vadd.f32 %v1360_v55, %v835_v3  ;;  %v838_v14 = vadd.f32 %v817_v49, %v556_v60  ;;  %v766_v26 = vpop.f32.mrf.mxu0  ;;  %v888_v31 = vmax.f32 %v872_v6, 0.0 }
 0x114   :  { %v819_v27 = vpop.f32.mrf.mxu1  ;;  %v887_v0 = vmax.f32 %v871_v10, 0.0  ;;  %v837_v28 = vadd.f32 %v766_v26, %v505_v63  ;;  %v874_v32 = vadd.f32 %v1354_v53, %v836_v13 }
 0x115   :  { %v889_v15 = vmax.f32 %v873_v11, 0.0  ;;  %v839_v29 = vadd.f32 %v819_v27, %v558_v1  ;;  %v876_v16 = vadd.f32 %v1356_v24, %v838_v14  ;;  %v770_v17 = vpop.f32.mrf.mxu0 }
 0x116   :  { %v823_v33 = vpop.f32.mrf.mxu1  ;;  %v875_v34 = vadd.f32 %v1358_v43, %v837_v28  ;;  %v840_v19 = vadd.f32 %v770_v17, %v509_v4  ;;  %v890_v36 = vmax.f32 %v874_v32, 0.0  ;;  %v902_v40 = vadd.f32 %v887_v0, %v886_v30 }
 0x117   :  { %v877_v18 = vadd.f32 %v1360_v55, %v839_v29  ;;  %v842_v35 = vadd.f32 %v823_v33, %v562_v5  ;;  %v892_v37 = vmax.f32 %v876_v16, 0.0  ;;  %v772_v38 = vpop.f32.mrf.mxu0  ;;  %v906_v41 = vadd.f32 %v889_v15, %v888_v31 }
 0x118   :  { %v825_v39 = vpop.f32.mrf.mxu1  ;;  %v891_v23 = vmax.f32 %v875_v34, 0.0  ;;  %v878_v44 = vadd.f32 %v1354_v53, %v840_v19  ;;  %v841_v51 = vadd.f32 %v772_v38, %v511_v8 }
 0x119   :  { %v893_v42 = vmax.f32 %v877_v18, 0.0  ;;  %v880_v45 = vadd.f32 %v1356_v24, %v842_v35  ;;  %v843_v52 = vadd.f32 %v825_v39, %v564_v9  ;;  %v774_v54 = vpop.f32.mrf.mxu0  ;;  %v910_v57 = vadd.f32 %v906_v41, %v902_v40 }
 0x11a   :  { %v827_v56 = vpop.f32.mrf.mxu1  ;;  %v903_v59 = vadd.f32 %v891_v23, %v890_v36  ;;  %v894_v60 = vmax.f32 %v878_v44, 0.0  ;;  %v879_v61 = vadd.f32 %v1358_v43, %v841_v51  ;;  %v844_v63 = vadd.f32 %v774_v54, %v513_v12 }
 0x11b   :  { %v907_v25 = vadd.f32 %v893_v42, %v892_v37  ;;  %v881_v62 = vadd.f32 %v1360_v55, %v843_v52  ;;  %v846_v1 = vadd.f32 %v827_v56, %v566_v22  ;;  %914 = vrot.lane.b32.xlu0 %v910_v57, %s1202_s2  ;;  %v776_v20 = vpop.f32.mrf.mxu0  ;;  %v896_v2 = vmax.f32 %v880_v45, 0.0 }
 0x11c   :  { %v829_v46 = vpop.f32.mrf.mxu1  ;;  %v845_v3 = vadd.f32 %v776_v20, %v515_v50  ;;  %v895_v48 = vmax.f32 %v879_v61, 0.0  ;;  %v882_v21 = vadd.f32 %v1354_v53, %v844_v63 }
 0x11d   :  { %v847_v4 = vadd.f32 %v829_v46, %v568_v58  ;;  %v911_v5 = vadd.f32 %v907_v25, %v903_v59  ;;  %v897_v6 = vmax.f32 %v881_v62, 0.0  ;;  %v884_v47 = vadd.f32 %v1356_v24, %v846_v1 }
 0x11e   :  { %v883_v7 = vadd.f32 %v1358_v43, %v845_v3  ;;  %v904_v8 = vadd.f32 %v895_v48, %v894_v60  ;;  %v898_v10 = vmax.f32 %v882_v21, 0.0 }
 0x11f   :  { %v885_v49 = vadd.f32 %v1360_v55, %v847_v4  ;;  %916 = vrot.lane.b32.xlu0 %v911_v5, %s1202_s2  ;;  %v908_v9 = vadd.f32 %v897_v6, %v896_v2  ;;  %v900_v11 = vmax.f32 %v884_v47, 0.0 }
 0x120   :  { %v899_v12 = vmax.f32 %v883_v7, 0.0 }
 0x121   :  { %v901_v22 = vmax.f32 %v885_v49, 0.0  ;;  %v912_v13 = vadd.f32 %v908_v9, %v904_v8 }
 0x122   :  { %v905_v14 = vadd.f32 %v899_v12, %v898_v10 }
 0x123   :  { %v909_v26 = vadd.f32 %v901_v22, %v900_v11  ;;  %918 = vrot.lane.b32.xlu1 %v912_v13, %s1202_s2 }
 0x125   :  { %v913_v27 = vadd.f32 %v909_v26, %v905_v14 }
 0x127   :  { %920 = vrot.lane.b32.xlu1 %v913_v27, %s1202_s2 }
 0x18d   :  { %v915_v53 = vpop.permute.xlu0 %914 }
 0x18e   :  { %v922_v0 = vadd.f32 %v915_v53, %v910_v57 }
 0x190   :  { %926 = vrot.lane.b32.xlu0 %v922_v0, %s1203_s8 }
 0x191   :  { %v917_v24 = vpop.permute.xlu0 %916 }
 0x192   :  { %v923_v43 = vadd.f32 %v917_v24, %v911_v5 }
 0x194   :  { %928 = vrot.lane.b32.xlu1 %v923_v43, %s1203_s8 }
 0x195   :  { %v919_v55 = vpop.permute.xlu1 %918 }
 0x196   :  { %v924_v15 = vadd.f32 %v919_v55, %v912_v13 }
 0x198   :  { %930 = vrot.lane.b32.xlu0 %v924_v15, %s1203_s8 }
 0x199   :  { %v921_v28 = vpop.permute.xlu1 %920 }
 0x19a   :  { %v925_v29 = vadd.f32 %v921_v28, %v913_v27 }
 0x19c   :  { %932 = vrot.lane.b32.xlu1 %v925_v29, %s1203_s8 }
 0x202   :  { %v927_v30 = vpop.permute.xlu0 %926 }
 0x203   :  { %v934_v32 = vadd.f32 %v927_v30, %v922_v0 }
 0x206   :  { %v929_v31 = vpop.permute.xlu1 %928 }
 0x207   :  { %v935_v16 = vadd.f32 %v929_v31, %v923_v43 }
 0x209   :  { %v938_v17 = vadd.f32 %v935_v16, %v934_v32 }
 0x20a   :  { %v931_v34 = vpop.permute.xlu0 %930 }
 0x20b   :  { %v939_v33 = vrot.slane %v938_v17, 4  ;;  %v936_v36 = vadd.f32 %v931_v34, %v924_v15 }
 0x20d   :  { %v940_v18 = vadd.f32 %v939_v33, %v938_v17 }
 0x20e   :  { %v933_v19 = vpop.permute.xlu1 %932 }
 0x20f   :  { %v941_v35 = vrot.slane %v940_v18, 2  ;;  %v937_v37 = vadd.f32 %v933_v19, %v925_v29 }
 0x211   :  { %v945_v38 = vadd.f32 %v937_v37, %v936_v36  ;;  %v942_v39 = vadd.f32 %v941_v35, %v940_v18 }
 0x213   :  { %v946_v40 = vrot.slane %v945_v38, 4  ;;  %v943_v23 = vrot.slane %v942_v39, 1 }
 0x215   :  { %v947_v41 = vadd.f32 %v946_v40, %v945_v38  ;;  %v944_v50 = vadd.f32 %v943_v23, %v942_v39 }
 0x217   :  { %v948_v42 = vrot.slane %v947_v41, 2  ;;  %v952_v52 = vmul.f32 0.00390625, %v944_v50 }
 0x219   :  { %v949_v44 = vadd.f32 %v948_v42, %v947_v41 }
 0x21b   :  { %v950_v45 = vrot.slane %v949_v44, 1 }
 0x21d   :  { %v951_v51 = vadd.f32 %v950_v45, %v949_v44 }
 0x21f   :  { %v953_v54 = vmul.f32 0.00390625, %v951_v51 }
 0x221   :  { %v957_v56 = vsel %vm956_vm8, %v953_v54, %v952_v52 }
 0x222   :  { %959 = vst [vmem:[#allocation5] sm:$0x3] %v957_v56 }
 0x223   :  { %1185 = shalt.err (!%p1182_p9)
}
 0x224   :  { %969 = dma.vmem_to_hbm [thread:$0]  %s967_s10, 32, %s1387_s3, [#allocation4]  }
 0x225   :  { %1196 = dma.done.wait [#allocation4], 32  }
 0x226   :  { %1197 = vsyncadd [#allocation4], 4294967264 }
 0x227   :  { %973 = vsyncpa [#allocation3], 1 }
 0x228   :  { %974 = vsyncpa [#allocation4], 1 }

</bundles_post_ra>
